<compile_context>
chip_gen: v6e
topology: v6e:2x2x1
jax: 0.10.0
libtpu: 0.0.40
codegen_flags: <defaults>
</compile_context>

<pallas_src>
import functools

import jax
import jax.numpy as jnp
from jax import lax
from jax.experimental import pallas as pl
from jax.experimental.pallas import tpu as pltpu


def pam_kernel(xq_ref, xkv_ref, mmat_ref, kb_ref, wv_ref, bv_ref, gamma_ref,
               o_ref, qm_sc, m_sc, l_sc, acc_sc):
    ki = pl.program_id(2)

    @pl.when(ki == 0)
    def _init():
        # Query-side projection through M = Wq^T Wk, with the surviving
        # key-bias term kb = Wk^T bq folded in (it contracts against x_kv).
        xq = xq_ref[0]                                            # (C, TQ) bf16
        qm = lax.dot_general(mmat_ref[...], xq,
                             (((0,), (0,)), ((), ())),
                             preferred_element_type=jnp.float32)  # (C, TQ) f32
        qm_sc[...] = (qm + kb_ref[...]).astype(jnp.bfloat16)
        m_sc[...] = jnp.full_like(m_sc, -jnp.inf)
        l_sc[...] = jnp.zeros_like(l_sc)
        acc_sc[...] = jnp.zeros_like(acc_sc)

    xkv = xkv_ref[0]                                              # (C, TK) bf16

    # energy^T[j, i] = q_i . k_j  (keys on sublanes, queries on lanes), so the
    # softmax stats come out lane-shaped (1, TQ) and rescale acc directly —
    # no transposed copies, contraction is over the leading channel dims.
    e = lax.dot_general(xkv, qm_sc[...], (((0,), (0,)), ((), ())),
                        preferred_element_type=jnp.float32)       # (TK, TQ)

    m_new = jnp.maximum(m_sc[...], jnp.max(e, axis=0, keepdims=True))  # (1, TQ)
    alpha = jnp.exp(m_sc[...] - m_new)                                 # (1, TQ)
    p = jnp.exp(e - m_new)                                             # (TK, TQ)

    # Value 1x1 conv for this kv tile: v[c, j] = (Wv x_kv + bv)[c, j].
    v = (jnp.dot(wv_ref[...], xkv, preferred_element_type=jnp.float32)
         + bv_ref[...])                                           # (C, TK) f32

    l_sc[...] = alpha * l_sc[...] + jnp.sum(p, axis=0, keepdims=True)
    acc_sc[...] = alpha * acc_sc[...] + lax.dot_general(
        v.astype(jnp.bfloat16), p.astype(jnp.bfloat16),
        (((1,), (0,)), ((), ())), preferred_element_type=jnp.float32)  # (C, TQ)
    m_sc[...] = m_new

    @pl.when(ki == pl.num_programs(2) - 1)
    def _finalize():
        inv_l = pl.reciprocal(l_sc[...], approx=True)             # (1, TQ)
        out = acc_sc[...] * inv_l                                 # (C, TQ)
        # gamma * out + x  (residual); lane-dense (..., TQ) store.
        o_ref[0] = gamma_ref[0, 0] * out + xq_ref[0].astype(jnp.float32)


@functools.partial(jax.jit, static_argnames=("tq", "tk"))
def pam_forward(x, wq, bq, wk, bk, wv, bv, gamma, *, tq=128, tk=128):
    """x: (B, C, H, W) float32 (NCHW). Conv2d 1x1 weights given as (out, in).

    bk is accepted for API parity with the module but cancels under the
    softmax, so it is not needed by the kernel.
    """
    del bk  # key-side additive bias is row-constant under softmax -> cancels
    B, C, H, W = x.shape
    N = H * W
    if N % tq != 0 or N % tk != 0:      # tiny inputs: single tile
        tq = tk = N

    # Channel-major, lane-dense layout — no transposes, just a reshape.
    x_flat = x.reshape(B, C, N).astype(jnp.bfloat16)

    # Fused query/key projection: M = Wq^T Wk, kb = Wk^T bq.
    mmat = (wq.T @ wk).astype(jnp.bfloat16)            # (C, C)
    kb = (bq @ wk).reshape(C, 1).astype(jnp.float32)   # (C, 1)
    wv_b = wv.astype(jnp.bfloat16)                     # (C, C)
    bv_c = bv.reshape(C, 1).astype(jnp.float32)        # (C, 1)
    gamma_s = gamma.reshape(1, 1).astype(jnp.float32)  # scalar, lives in SMEM

    grid = (B, N // tq, N // tk)

    out_flat = pl.pallas_call(
        pam_kernel,
        out_shape=jax.ShapeDtypeStruct((B, C, N), jnp.float32),
        grid_spec=pltpu.PrefetchScalarGridSpec(
            num_scalar_prefetch=0,
            grid=grid,
            in_specs=[
                pl.BlockSpec((1, C, tq), lambda b, qi, ki: (b, 0, qi)),  # x (query tile)
                pl.BlockSpec((1, C, tk), lambda b, qi, ki: (b, 0, ki)),  # x (key/value tile)
                pl.BlockSpec((C, C), lambda b, qi, ki: (0, 0)),          # M = Wq^T Wk
                pl.BlockSpec((C, 1), lambda b, qi, ki: (0, 0)),          # kb = Wk^T bq
                pl.BlockSpec((C, C), lambda b, qi, ki: (0, 0)),          # Wv
                pl.BlockSpec((C, 1), lambda b, qi, ki: (0, 0)),          # bv
                pl.BlockSpec(memory_space=pltpu.MemorySpace.SMEM),       # gamma scalar
            ],
            out_specs=pl.BlockSpec((1, C, tq), lambda b, qi, ki: (b, 0, qi)),
            scratch_shapes=[
                pltpu.VMEM((C, tq), jnp.bfloat16),   # projected query tile (M x_q + kb)
                pltpu.VMEM((1, tq), jnp.float32),    # running max
                pltpu.VMEM((1, tq), jnp.float32),    # running sum
                pltpu.VMEM((C, tq), jnp.float32),    # output accumulator
            ],
        ),
        compiler_params=pltpu.CompilerParams(
            dimension_semantics=("parallel", "parallel", "arbitrary"),
            vmem_limit_bytes=48 * 1024 * 1024,
        ),
    )(x_flat, x_flat, mmat, kb, wv_b, bv_c, gamma_s)

    # (B, C, N) -> (B, C, H, W): pure reshape, no transpose pass.
    return out_flat.reshape(B, C, H, W)


def pam_reference(x, wq, bq, wk, bk, wv, bv, gamma):
    """Pure-JAX f32 reference mirroring the PyTorch forward exactly."""
    B, C, H, W = x.shape
    N = H * W
    x_flat = x.reshape(B, C, N)                                     # (B, C, N)
    q = jnp.einsum('oc,bcn->bon', wq, x_flat) + bq[None, :, None]   # (B, Cq, N)
    k = jnp.einsum('oc,bcn->bon', wk, x_flat) + bk[None, :, None]
    v = jnp.einsum('oc,bcn->bon', wv, x_flat) + bv[None, :, None]   # (B, C, N)
    energy = jnp.einsum('bci,bcj->bij', q, k)                       # (B, N, N)
    attn = jax.nn.softmax(energy, axis=-1)
    out = jnp.einsum('bcj,bij->bci', v, attn)                       # (B, C, N)
    return gamma * out.reshape(B, C, H, W) + x


if __name__ == "__main__":
    B, C, H, W = 2, 16, 16, 16          # in_dim=16 -> query/key channels = 2
    Cq = C // 8

    key = jax.random.PRNGKey(0)
    kx, kwq, kbq, kwk, kbk, kwv, kbv = jax.random.split(key, 7)

    x = jax.random.normal(kx, (B, C, H, W), dtype=jnp.float32)

    # Deterministic synthetic parameters (Conv2d 1x1 weights, kernel dims squeezed).
    wq = 0.1 * jax.random.normal(kwq, (Cq, C), dtype=jnp.float32)
    bq = 0.1 * jax.random.normal(kbq, (Cq,), dtype=jnp.float32)
    wk = 0.1 * jax.random.normal(kwk, (Cq, C), dtype=jnp.float32)
    bk = 0.1 * jax.random.normal(kbk, (Cq,), dtype=jnp.float32)
    wv = 0.1 * jax.random.normal(kwv, (C, C), dtype=jnp.float32)
    bv = 0.1 * jax.random.normal(kbv, (C,), dtype=jnp.float32)
    # The module inits gamma to 0 (which would make the test vacuous);
    # use a nonzero value so the attention path actually gets checked.
    gamma = 0.5 * jnp.ones((1,), dtype=jnp.float32)

    out = pam_forward(x, wq, bq, wk, bk, wv, bv, gamma)
    out = jax.block_until_ready(out)

    ref = pam_reference(x, wq, bq, wk, bk, wv, bv, gamma)
    assert out.shape == (B, C, H, W)
    # bf16 MXU operands (x, M, Wv, attn) -> looser tolerance vs the f32 reference.
    err = float(jnp.max(jnp.abs(out - ref)))
    assert jnp.allclose(out, ref, atol=2e-2, rtol=2e-2), f"mismatch vs reference, max abs err={err}"

    print("KERNEL_OK")
</pallas_src>

<mosaic_0001>
module attributes {stable_mosaic.version = 11 : i64} {
  func.func @pam_kernel(%arg0: i32, %arg1: i32, %arg2: i32, %arg3: memref<1x16x128xbf16, #tpu.memory_space<vmem>>, %arg4: memref<1x16x128xbf16, #tpu.memory_space<vmem>>, %arg5: memref<16x16xbf16, #tpu.memory_space<vmem>>, %arg6: memref<16x1xf32, #tpu.memory_space<vmem>>, %arg7: memref<16x16xbf16, #tpu.memory_space<vmem>>, %arg8: memref<16x1xf32, #tpu.memory_space<vmem>>, %arg9: memref<1x1xf32, #tpu.memory_space<smem>>, %arg10: memref<1x16x128xf32, #tpu.memory_space<vmem>>, %arg11: memref<16x128xbf16, #tpu.memory_space<vmem>>, %arg12: memref<1x128xf32, #tpu.memory_space<vmem>>, %arg13: memref<1x128xf32, #tpu.memory_space<vmem>>, %arg14: memref<16x128xf32, #tpu.memory_space<vmem>>) attributes {dimension_semantics = [#tpu.dimension_semantics<parallel>, #tpu.dimension_semantics<parallel>, #tpu.dimension_semantics<arbitrary>], iteration_bounds = array<i64: 2, 2, 2>, scalar_prefetch = 0 : i64, scratch_operands = 4 : i64, tpu.core_type = #tpu.core_type<tc>, window_params = [{transform_indices = @transform_0, window_bounds = array<i64: 1, 16, 128>}, {transform_indices = @transform_1, window_bounds = array<i64: 1, 16, 128>}, {pipeline_mode = #tpu.pipeline_mode<synchronous>, transform_indices = @transform_2, window_bounds = array<i64: 16, 16>}, {pipeline_mode = #tpu.pipeline_mode<synchronous>, transform_indices = @transform_3, window_bounds = array<i64: 16, 1>}, {pipeline_mode = #tpu.pipeline_mode<synchronous>, transform_indices = @transform_4, window_bounds = array<i64: 16, 16>}, {pipeline_mode = #tpu.pipeline_mode<synchronous>, transform_indices = @transform_5, window_bounds = array<i64: 16, 1>}, {transform_indices = @transform_6, window_bounds = array<i64: 1, 1>}, {transform_indices = @transform_7, window_bounds = array<i64: 1, 16, 128>}]} {
    %c0_i32 = arith.constant 0 : i32
    %0 = arith.cmpi eq, %arg2, %c0_i32 : i32
    %1 = arith.extui %0 : i1 to i32
    %c0_i32_0 = arith.constant 0 : i32
    %2 = arith.cmpi ne, %1, %c0_i32_0 : i32
    scf.if %2 {
      %c0_28 = arith.constant 0 : index
      %c0_29 = arith.constant 0 : index
      %c0_30 = arith.constant 0 : index
      %40 = vector.load %arg3[%c0_28, %c0_29, %c0_30] : memref<1x16x128xbf16, #tpu.memory_space<vmem>>, vector<1x16x128xbf16>
      %41 = vector.shape_cast %40 : vector<1x16x128xbf16> to vector<16x128xbf16>
      %c0_31 = arith.constant 0 : index
      %c0_32 = arith.constant 0 : index
      %42 = vector.load %arg5[%c0_31, %c0_32] : memref<16x16xbf16, #tpu.memory_space<vmem>>, vector<16x16xbf16>
      %cst_33 = arith.constant dense<0.000000e+00> : vector<16x128xf32>
      %43 = tpu.matmul %42, %41, %cst_33 {dimension_numbers = #tpu.dot_dimension_numbers<[0], [0], [1], [1], [0, 1, 1, 1], [], []>} : vector<16x16xbf16>, vector<16x128xbf16>, vector<16x128xf32> -> vector<16x128xf32>
      %c0_34 = arith.constant 0 : index
      %c0_35 = arith.constant 0 : index
      %44 = vector.load %arg6[%c0_34, %c0_35] : memref<16x1xf32, #tpu.memory_space<vmem>>, vector<16x1xf32>
      %45 = vector.broadcast %44 : vector<16x1xf32> to vector<16x128xf32>
      %46 = arith.addf %43, %45 : vector<16x128xf32>
      %47 = arith.truncf %46 : vector<16x128xf32> to vector<16x128xbf16>
      %c0_36 = arith.constant 0 : index
      %c0_37 = arith.constant 0 : index
      %48 = vector.load %arg11[%c0_36, %c0_37] : memref<16x128xbf16, #tpu.memory_space<vmem>>, vector<16x128xbf16>
      tpu.vector_store %arg11[%c0_36, %c0_37], %47 {strides = array<i32>} : memref<16x128xbf16, #tpu.memory_space<vmem>>, vector<16x128xbf16>,
      %cst_38 = arith.constant 0xFF800000 : f32
      %49 = vector.broadcast %cst_38 : f32 to vector<1x128xf32>
      %c0_39 = arith.constant 0 : index
      %c0_40 = arith.constant 0 : index
      %50 = vector.load %arg12[%c0_39, %c0_40] : memref<1x128xf32, #tpu.memory_space<vmem>>, vector<1x128xf32>
      tpu.vector_store %arg12[%c0_39, %c0_40], %49 {strides = array<i32>} : memref<1x128xf32, #tpu.memory_space<vmem>>, vector<1x128xf32>,
      %cst_41 = arith.constant 0.000000e+00 : f32
      %51 = vector.broadcast %cst_41 : f32 to vector<1x128xf32>
      %c0_42 = arith.constant 0 : index
      %c0_43 = arith.constant 0 : index
      %52 = vector.load %arg13[%c0_42, %c0_43] : memref<1x128xf32, #tpu.memory_space<vmem>>, vector<1x128xf32>
      tpu.vector_store %arg13[%c0_42, %c0_43], %51 {strides = array<i32>} : memref<1x128xf32, #tpu.memory_space<vmem>>, vector<1x128xf32>,
      %cst_44 = arith.constant 0.000000e+00 : f32
      %53 = vector.broadcast %cst_44 : f32 to vector<16x128xf32>
      %c0_45 = arith.constant 0 : index
      %c0_46 = arith.constant 0 : index
      %54 = vector.load %arg14[%c0_45, %c0_46] : memref<16x128xf32, #tpu.memory_space<vmem>>, vector<16x128xf32>
      tpu.vector_store %arg14[%c0_45, %c0_46], %53 {strides = array<i32>} : memref<16x128xf32, #tpu.memory_space<vmem>>, vector<16x128xf32>,
    } else {
    }
    %c0 = arith.constant 0 : index
    %c0_1 = arith.constant 0 : index
    %c0_2 = arith.constant 0 : index
    %3 = vector.load %arg4[%c0, %c0_1, %c0_2] : memref<1x16x128xbf16, #tpu.memory_space<vmem>>, vector<1x16x128xbf16>
    %4 = vector.shape_cast %3 : vector<1x16x128xbf16> to vector<16x128xbf16>
    %c0_3 = arith.constant 0 : index
    %c0_4 = arith.constant 0 : index
    %5 = vector.load %arg11[%c0_3, %c0_4] : memref<16x128xbf16, #tpu.memory_space<vmem>>, vector<16x128xbf16>
    %cst = arith.constant dense<0.000000e+00> : vector<128x128xf32>
    %6 = tpu.matmul %4, %5, %cst {dimension_numbers = #tpu.dot_dimension_numbers<[0], [0], [1], [1], [0, 1, 1, 1], [], []>} : vector<16x128xbf16>, vector<16x128xbf16>, vector<128x128xf32> -> vector<128x128xf32>
    %c0_5 = arith.constant 0 : index
    %c0_6 = arith.constant 0 : index
    %7 = vector.load %arg12[%c0_5, %c0_6] : memref<1x128xf32, #tpu.memory_space<vmem>>, vector<1x128xf32>
    %cst_7 = arith.constant dense<0xFF800000> : vector<128xf32>
    %8 = vector.multi_reduction <maximumf>, %6, %cst_7 [0] : vector<128x128xf32> to vector<128xf32>
    %9 = vector.shape_cast %8 : vector<128xf32> to vector<1x128xf32>
    %10 = arith.maximumf %7, %9 : vector<1x128xf32>
    %c0_8 = arith.constant 0 : index
    %c0_9 = arith.constant 0 : index
    %11 = vector.load %arg12[%c0_8, %c0_9] : memref<1x128xf32, #tpu.memory_space<vmem>>, vector<1x128xf32>
    %12 = arith.subf %11, %10 : vector<1x128xf32>
    %13 = math.exp %12 : vector<1x128xf32>
    %14 = vector.broadcast %10 : vector<1x128xf32> to vector<128x128xf32>
    %15 = arith.subf %6, %14 : vector<128x128xf32>
    %16 = math.exp %15 : vector<128x128xf32>
    %c0_10 = arith.constant 0 : index
    %c0_11 = arith.constant 0 : index
    %17 = vector.load %arg7[%c0_10, %c0_11] : memref<16x16xbf16, #tpu.memory_space<vmem>>, vector<16x16xbf16>
    %cst_12 = arith.constant dense<0.000000e+00> : vector<16x128xf32>
    %18 = tpu.matmul %17, %4, %cst_12 {dimension_numbers = #tpu.dot_dimension_numbers<[1], [0], [0], [1], [0, 0, 1, 1], [], []>} : vector<16x16xbf16>, vector<16x128xbf16>, vector<16x128xf32> -> vector<16x128xf32>
    %c0_13 = arith.constant 0 : index
    %c0_14 = arith.constant 0 : index
    %19 = vector.load %arg8[%c0_13, %c0_14] : memref<16x1xf32, #tpu.memory_space<vmem>>, vector<16x1xf32>
    %20 = vector.broadcast %19 : vector<16x1xf32> to vector<16x128xf32>
    %21 = arith.addf %18, %20 : vector<16x128xf32>
    %c0_15 = arith.constant 0 : index
    %c0_16 = arith.constant 0 : index
    %22 = vector.load %arg13[%c0_15, %c0_16] : memref<1x128xf32, #tpu.memory_space<vmem>>, vector<1x128xf32>
    %23 = arith.mulf %13, %22 : vector<1x128xf32>
    %cst_17 = arith.constant dense<0.000000e+00> : vector<128xf32>
    %24 = vector.multi_reduction <add>, %16, %cst_17 [0] : vector<128x128xf32> to vector<128xf32>
    %25 = vector.shape_cast %24 : vector<128xf32> to vector<1x128xf32>
    %26 = arith.addf %23, %25 : vector<1x128xf32>
    %c0_18 = arith.constant 0 : index
    %c0_19 = arith.constant 0 : index
    %27 = vector.load %arg13[%c0_18, %c0_19] : memref<1x128xf32, #tpu.memory_space<vmem>>, vector<1x128xf32>
    tpu.vector_store %arg13[%c0_18, %c0_19], %26 {strides = array<i32>} : memref<1x128xf32, #tpu.memory_space<vmem>>, vector<1x128xf32>,
    %c0_20 = arith.constant 0 : index
    %c0_21 = arith.constant 0 : index
    %28 = vector.load %arg14[%c0_20, %c0_21] : memref<16x128xf32, #tpu.memory_space<vmem>>, vector<16x128xf32>
    %29 = vector.broadcast %13 : vector<1x128xf32> to vector<16x128xf32>
    %30 = arith.mulf %29, %28 : vector<16x128xf32>
    %31 = arith.truncf %21 : vector<16x128xf32> to vector<16x128xbf16>
    %32 = arith.truncf %16 : vector<128x128xf32> to vector<128x128xbf16>
    %cst_22 = arith.constant dense<0.000000e+00> : vector<16x128xf32>
    %33 = tpu.matmul %31, %32, %cst_22 {dimension_numbers = #tpu.dot_dimension_numbers<[1], [0], [0], [1], [0, 0, 1, 1], [], []>} : vector<16x128xbf16>, vector<128x128xbf16>, vector<16x128xf32> -> vector<16x128xf32>
    %34 = arith.addf %30, %33 : vector<16x128xf32>
    %c0_23 = arith.constant 0 : index
    %c0_24 = arith.constant 0 : index
    %35 = vector.load %arg14[%c0_23, %c0_24] : memref<16x128xf32, #tpu.memory_space<vmem>>, vector<16x128xf32>
    tpu.vector_store %arg14[%c0_23, %c0_24], %34 {strides = array<i32>} : memref<16x128xf32, #tpu.memory_space<vmem>>, vector<16x128xf32>,
    %c0_25 = arith.constant 0 : index
    %c0_26 = arith.constant 0 : index
    %36 = vector.load %arg12[%c0_25, %c0_26] : memref<1x128xf32, #tpu.memory_space<vmem>>, vector<1x128xf32>
    tpu.vector_store %arg12[%c0_25, %c0_26], %10 {strides = array<i32>} : memref<1x128xf32, #tpu.memory_space<vmem>>, vector<1x128xf32>,
    %c1_i32 = arith.constant 1 : i32
    %37 = arith.cmpi eq, %arg2, %c1_i32 : i32
    %38 = arith.extui %37 : i1 to i32
    %c0_i32_27 = arith.constant 0 : i32
    %39 = arith.cmpi ne, %38, %c0_i32_27 : i32
    scf.if %39 {
      %c0_28 = arith.constant 0 : index
      %c0_29 = arith.constant 0 : index
      %40 = vector.load %arg13[%c0_28, %c0_29] : memref<1x128xf32, #tpu.memory_space<vmem>>, vector<1x128xf32>
      %41 = tpu.reciprocal %40 {approx = true} : vector<1x128xf32> -> vector<1x128xf32>
      %c0_30 = arith.constant 0 : index
      %c0_31 = arith.constant 0 : index
      %42 = vector.load %arg14[%c0_30, %c0_31] : memref<16x128xf32, #tpu.memory_space<vmem>>, vector<16x128xf32>
      %43 = vector.broadcast %41 : vector<1x128xf32> to vector<16x128xf32>
      %44 = arith.mulf %42, %43 : vector<16x128xf32>
      %c0_32 = arith.constant 0 : index
      %c0_33 = arith.constant 0 : index
      %45 = memref.load %arg9[%c0_32, %c0_33] : memref<1x1xf32, #tpu.memory_space<smem>>
      %46 = vector.broadcast %45 : f32 to vector<16x128xf32>
      %47 = arith.mulf %46, %44 : vector<16x128xf32>
      %c0_34 = arith.constant 0 : index
      %c0_35 = arith.constant 0 : index
      %c0_36 = arith.constant 0 : index
      %48 = vector.load %arg3[%c0_34, %c0_35, %c0_36] : memref<1x16x128xbf16, #tpu.memory_space<vmem>>, vector<1x16x128xbf16>
      %49 = vector.shape_cast %48 : vector<1x16x128xbf16> to vector<16x128xbf16>
      %50 = arith.extf %49 : vector<16x128xbf16> to vector<16x128xf32>
      %51 = arith.addf %47, %50 : vector<16x128xf32>
      %c0_37 = arith.constant 0 : index
      %c0_38 = arith.constant 0 : index
      %c0_39 = arith.constant 0 : index
      %52 = vector.load %arg10[%c0_37, %c0_38, %c0_39] : memref<1x16x128xf32, #tpu.memory_space<vmem>>, vector<1x16x128xf32>
      %53 = vector.shape_cast %52 : vector<1x16x128xf32> to vector<16x128xf32>
      %54 = vector.shape_cast %51 : vector<16x128xf32> to vector<1x16x128xf32>
      tpu.vector_store %arg10[%c0_37, %c0_38, %c0_39], %54 {strides = array<i32>} : memref<1x16x128xf32, #tpu.memory_space<vmem>>, vector<1x16x128xf32>,
    } else {
    }
    return
  }
  func.func @transform_0(%arg0: i32, %arg1: i32, %arg2: i32) -> (i32, i32, i32) {
    %c0_i32 = arith.constant 0 : i32
    %c0_i32_0 = arith.constant 0 : i32
    return %arg0, %c0_i32, %arg1 : i32, i32, i32
  }
  func.func @transform_1(%arg0: i32, %arg1: i32, %arg2: i32) -> (i32, i32, i32) {
    %c0_i32 = arith.constant 0 : i32
    %c0_i32_0 = arith.constant 0 : i32
    return %arg0, %c0_i32, %arg2 : i32, i32, i32
  }
  func.func @transform_2(%arg0: i32, %arg1: i32, %arg2: i32) -> (i32, i32) {
    %c0_i32 = arith.constant 0 : i32
    %c0_i32_0 = arith.constant 0 : i32
    %c0_i32_1 = arith.constant 0 : i32
    return %c0_i32, %c0_i32_0 : i32, i32
  }
  func.func @transform_3(%arg0: i32, %arg1: i32, %arg2: i32) -> (i32, i32) {
    %c0_i32 = arith.constant 0 : i32
    %c0_i32_0 = arith.constant 0 : i32
    %c0_i32_1 = arith.constant 0 : i32
    return %c0_i32, %c0_i32_0 : i32, i32
  }
  func.func @transform_4(%arg0: i32, %arg1: i32, %arg2: i32) -> (i32, i32) {
    %c0_i32 = arith.constant 0 : i32
    %c0_i32_0 = arith.constant 0 : i32
    %c0_i32_1 = arith.constant 0 : i32
    return %c0_i32, %c0_i32_0 : i32, i32
  }
  func.func @transform_5(%arg0: i32, %arg1: i32, %arg2: i32) -> (i32, i32) {
    %c0_i32 = arith.constant 0 : i32
    %c0_i32_0 = arith.constant 0 : i32
    %c0_i32_1 = arith.constant 0 : i32
    return %c0_i32, %c0_i32_0 : i32, i32
  }
  func.func @transform_6(%arg0: i32, %arg1: i32, %arg2: i32) -> (i32, i32) {
    %c0_i32 = arith.constant 0 : i32
    %c0_i32_0 = arith.constant 0 : i32
    %c0_i32_1 = arith.constant 0 : i32
    return %c0_i32, %c0_i32_0 : i32, i32
  }
  func.func @transform_7(%arg0: i32, %arg1: i32, %arg2: i32) -> (i32, i32, i32) {
    %c0_i32 = arith.constant 0 : i32
    %c0_i32_0 = arith.constant 0 : i32
    return %arg0, %c0_i32, %arg1 : i32, i32, i32
  }
}

</mosaic_0001>

<bundles_post_ra>
// kernel: pam_forward.1
= control target key start
LH: loop header
LB: loop body
LE: loop exit
PB: predicated region body
PF: predicated region fallthrough
CT: control target
= control target key end

     0   :  { %s1776_s0 = inlined_call_operand.vmem [shape: bf16[2,16,256], index: 0, kind: input, shape index: {}, may-alias: {0,1}]   ;;  %s1777_s1 = inlined_call_operand.vmem [shape: bf16[2,16,256], index: 1, kind: input, shape index: {}, may-alias: {0,1}]   ;;  %s1778_s2 = inlined_call_operand.vmem [shape: bf16[16,16], index: 2, kind: input, shape index: {}]   ;;  %s1779_s3 = inlined_call_operand.vmem [shape: f32[16,1], index: 3, kind: input, shape index: {}]   ;;  %s1780_s4 = inlined_call_operand.vmem [shape: bf16[16,16], index: 4, kind: input, shape index: {}]   ;;  %s1781_s5 = inlined_call_operand.vmem [shape: f32[16,1], index: 5, kind: input, shape index: {}]   ;;  %s1782_s6 = inlined_call_operand.<no memory space> [shape: f32[1,1], index: 6, kind: input, shape index: {}]   ;;  %s1783_s7 = inlined_call_operand.vmem [shape: f32[2,16,256], index: 7, kind: output, shape index: {}]  }
   0x1   :  { %1788 = sst [smem:[#allocation15_spill]] %s1783_s7 }
   0x2   :  { %12 = sst [smem:[#allocation6]] %s1782_s6 }
   0x3   :  { %s1485_s26 = smov 0   ;;  %s1487_s27 = smov 0  }
   0x4   :  { %s1489_s28 = smov 0   ;;  %s1491_s29 = smov 0  }
   0x5   :  { %s1493_s30 = smov 0   ;;  %s1495_s8 = smov 0  }
   0x6   :  { %s1497_s9 = smov 0   ;;  %s1499_s10 = smov 0  }
   0x7   :  { %s1501_s11 = smov 0   ;;  %s1503_s12 = smov 0  }
   0x8   :  { %s1505_s6 = smov 0  }
   0x9 LB: > { %1789 = sst [smem:[#allocation10_spill]] %s1413_s8  ;;  %s30_s13 = sadd.s32 1, %s1421_s10  ;;  %s1433_s6 = sphi %s1505_s6, %s18_s6   ;;  %s1429_s12 = sphi %s1503_s12, %s1810_s12   ;;  %s1425_s11 = sphi %s1501_s11, %s1801_s11   ;;  %s1421_s10 = sphi %s1499_s10, %s1809_s10   ;;  %s1417_s9 = sphi %s1497_s9, %s1808_s9   ;;  %s1413_s8 = sphi %s1495_s8, %s1799_s8   ;;  %s1409_s30 = sphi %s1493_s30, %s1807_s30   ;;  %s1405_s29 = sphi %s1491_s29, %s1806_s29   ;;  %s1401_s28 = sphi %s1489_s28, %s1805_s28   ;;  %s1397_s27 = sphi %s1487_s27, %s1804_s27   ;;  %s1393_s26 = sphi %s1485_s26, %s1803_s26  }
   0xa   : > { %1790 = sst [smem:[#allocation11_spill]] %s1425_s11  ;;  %p31_p0 = scmp.ge.s32.totalorder %s30_s13, 2 }
   0xb   : > { %s33_s14 = sadd.s32 1, %s1425_s11  ;;  %p53_p1 = scmp.ne.s32.totalorder %s1405_s29, %s1401_s28 }
   0xc   : > { %s1812_s13 = smov (%p31_p0, %s30_s13), 0  ;;  %s1814_s14 = smov (!%p31_p0, %s33_s14), %s1425_s11 }
   0xd   : > { %1791 = sst [smem:[#allocation12_spill]] %s1812_s13  ;;  %p54_p2 = scmp.eq.s32.totalorder %s1433_s6, 0 }
   0xe   : > { %p35_p3 = scmp.ge.s32.totalorder %s1814_s14, 2  ;;  %s37_s15 = sadd.s32 1, %s1429_s12 }
   0xf   : > { %s1086_s16 = sadd.s32 4294967295, %s1433_s6   ;;  %p1553_p4 = por %p54_p2, %p53_p1 }
  0x10   : > { %s1816_s14 = smov (%p35_p3, %s1814_s14), 0  ;;  %s1818_s15 = smov (!%p35_p3, %s37_s15), %s1429_s12 }
  0x11   : > { %1793 = sst [smem:[#allocation13_spill]] %s1816_s14  ;;  %s70_s18 = ssub.s32 %s1421_s10, %s1812_s13 }
  0x12   : > { %p81_p5 = scmp.ne.s32.totalorder %s1397_s27, %s1393_s26  ;;  %p39_p6 = scmp.ge.s32.totalorder %s1818_s15, 2 }
  0x13   : > { %p218_p7 = scmp.eq.s32.totalorder %s1086_s16, 7  ;;  %s42_s19 = ssub.s32 %s1425_s11, %s1816_s14 }
  0x14   : > { %p1566_p8 = por %p81_p5, %p54_p2  ;;  %s1820_s15 = smov (%p39_p6, %s1818_s15), 0 }
  0x15   : > { %1795 = sst [smem:[#allocation14_spill]] %s1820_s15  ;;  %s46_s21 = sadd.s32 1, %s1405_s29 }
  0x16   : > { %p1576_p9 = por %p218_p7, %p53_p1  ;;  %s41_s23 = ssub.s32 %s1429_s12, %s1820_s15 }
  0x17   : > { %s74_s24 = sadd.s32 1, %s1397_s27  ;;  %s43_s25 = sor.u32 %s42_s19, %s41_s23 }
  0x18   : > { %s71_s13 = sor.u32 %s70_s18, %s41_s23  ;;  %p44_p10 = scmp.eq.s32.totalorder %s43_s25, 0 }
  0x19   : > { %p72_p11 = scmp.eq.s32.totalorder %s71_s13, 0  ;;  %p1089_p12 = scmp.ge.s32.totalorder %s1433_s6, 8 }
  0x1a   : > { %s1584_s16 = scalar_select %p44_p10, %s1405_s29, %s46_s21  }
  0x1b   : > { %s1587_s14 = scalar_select %p72_p11, %s1397_s27, %s74_s24  }
  0x1c   : > { %255 = sbr.rel (%p1089_p12) target bundleno = 47 (0x2f), region = 36 }
  0x21   : > { %258 = sbr.rel (!%p1553_p4) target bundleno = 40 (0x28), region = 40  ;;  %s260_s7 = sand.u32 (%p1553_p4), 1, %s1405_s29  }
  0x22   : > { %s1091_s15 = sshll.u32 (%p1553_p4), %s1429_s12, 2  ;;  %s1090_s8 = sshll.u32 (%p1553_p4), %s260_s7, 3 }
  0x23   : > { %s264_s19 = sadd.s32 (%p1553_p4), %s1425_s11, %s1091_s15  ;;  %s262_s24 = scalar_lea.vmem (%p1553_p4), [#allocation7], %s1090_s8 }
  0x24   : > { %s1092_s18 = sshll.u32 (%p1553_p4), %s264_s19, 2 }
  0x25   : > { %s266_s21 = scalar_lea.vmem (%p1553_p4), %s1776_s0, %s1092_s18 }
  0x26   : > { %v283_v0 = vld [vmem:[%s266_s21] sm:$0xf]  ;;  %v285_v1 = vld [vmem:[%s266_s21 + $0x8] sm:$0xf] }
  0x27   : > { %284 = vst [vmem:[%s262_s24] sm:$0xf] %v283_v0  ;;  %286 = vst [vmem:[%s262_s24 + $0x4] sm:$0xf] %v285_v1 }
  0x28 PF: > { %314 = sbr.rel (!%p1566_p8) target bundleno = 47 (0x2f), region = 81  ;;  %s316_s17 = sand.u32 (%p1566_p8), 1, %s1397_s27  }
  0x29   : > { %s1094_s7 = sshll.u32 (%p1566_p8), %s1429_s12, 2  ;;  %s1093_s15 = sshll.u32 (%p1566_p8), %s316_s17, 3 }
  0x2a   : > { %s320_s25 = sadd.s32 (%p1566_p8), %s1421_s10, %s1094_s7  ;;  %s318_s8 = scalar_lea.vmem (%p1566_p8), [#allocation8], %s1093_s15 }
  0x2b   : > { %s1095_s19 = sshll.u32 (%p1566_p8), %s320_s25, 2 }
  0x2c   : > { %s322_s18 = scalar_lea.vmem (%p1566_p8), %s1777_s1, %s1095_s19 }
  0x2d   : > { %v339_v2 = vld [vmem:[%s322_s18] sm:$0xf]  ;;  %v341_v3 = vld [vmem:[%s322_s18 + $0x8] sm:$0xf] }
  0x2e   : > { %340 = vst [vmem:[%s318_s8] sm:$0xf] %v339_v2  ;;  %342 = vst [vmem:[%s318_s8 + $0x4] sm:$0xf] %v341_v3 }
  0x2f PF: > { %p1096_p13 = scmp.ge.s32.totalorder %s1433_s6, 1  ;;  %p369_p0 = scmp.lt.s32.totalorder %s1433_s6, 9 }
  0x31   : > { %p370_p1 = pnand %p1096_p13, %p369_p0 }
  0x32   : > { %s376_s20 = sand.u32 (!%p370_p1), 1, %s1401_s28   ;;  %s383_s13 = sand.u32 (!%p370_p1), 1, %s1393_s26  }
  0x33   : > { %373 = sbr.rel (%p370_p1) target bundleno = 1008 (0x3f0), region = 122  ;;  %s1610_s21 = sshll.u32 (!%p370_p1), %s376_s20, 3 }
  0x34   : > { %s1612_s11 = sshll.u32 (!%p370_p1), %s383_s13, 3  ;;  %s1099_s24 = sshll.u32 (!%p370_p1), %s376_s20, 4 }
  0x35   : > { %s378_s17 = scalar_lea.vmem (!%p370_p1), [#allocation7], %s1610_s21  ;;  %s385_s7 = scalar_lea.vmem (!%p370_p1), [#allocation8], %s1612_s11 }
  0x36   : > { %s1616_s15 = scalar_lea.vmem (!%p370_p1), [#allocation9], %s1099_s24  ;;  %p1100_p2 = scmp.ne.s32.totalorder (!%p370_p1), %s1409_s30, 0 }
  0x38   : > { %421 = sbr.rel (%p1100_p2) target bundleno = 363 (0x16b), region = 134 }
  0x3d   : > { %v1304_v4 = vld [vmem:[%s1778_s2] sm:$0xff]   ;;  %v1435_v5 = vmov 0.0   ;;  %vm1436_vm0 = vmmov 0   ;;  %v427_v7 = vld [vmem:[%s1779_s3 + $0x8] sm:$0xff]  ;;  %v1437_v8 = vmov 0   ;;  %vm466_vm1 = vcmask 130048  }
  0x3e   : > { %1157 = vmatprep.subr.bf16.mxu0 %v1435_v5  ;;  %522 = vst [vmem:[#allocation4] sm:$0x1] %v1435_v5  ;;  %523 = vst [vmem:[#allocation5] sm:$0xff] %v1435_v5  ;;  %v1305_v6 = vld [vmem:[%s378_s17] sm:$0xff]   ;;  %444 = vxpose.xlu0.c.b16.start.end [1/1] (short) (narrow) %v1304_v4, 16  ;;  %v1438_v11 = vmov -inf  }
  0x3f   : > { %524 = vst [vmem:[#allocation5 + $0x8] sm:$0xff] %v1435_v5  ;;  %1159 = vmatprep.mubr.msk.bf16.mxu0 %vm1436_vm0, %v1435_v5  ;;  %1158 = vmatpush3.bf16.msra.mxu0 %v1305_v6  ;;  %v426_v9 = vld [vmem:[%s1779_s3] sm:$0xff]  ;;  %521 = vst [vmem:[#allocation3] sm:$0x1] %v1438_v11 }
  0x40   : > { %1303 = vset.pattern.permute.xlu1 %v1437_v8 }
  0x41   : > { %435 = vperm.xlu1 %1303, %v427_v7  }
  0x47   : > { %1302 = vset.pattern.permute.xlu0 %v1437_v8 }
  0x48   : > { %430 = vperm.xlu0 %1302, %v426_v9  }
  0xa0   : > { %v452_v10 = vpop.trf.xlu0 }
  0xa1   : > { %1160 = vmatmul.mubr.msk.bf16.vlgmr.msra.gmra.mxu0 %vm466_vm1, %v452_v10 }
  0xbc   : > { %v436_v15 = vpop.permute.xlu1 %435 }
  0xc3   : > { %v431_v13 = vpop.permute.xlu0 %430 }
 0x161   : > { %v504_v12 = vpop.f32.mrf.mxu0 }
 0x162   : > { %v505_v17 = vadd.f32 %v504_v12, %v431_v13 }
 0x163   : > { %v1161_v14 = vpop.f32.mrf.mxu0 }
 0x165   : > { %v507_v16 = vpop.f32.mrf.mxu0 }
 0x166   : > { %v508_v18 = vadd.f32 %v507_v16, %v436_v15 }
 0x167   : > { %v1162_v19 = vpop.f32.mrf.mxu0 }
 0x168   : > { %v1129_v20 = vpack.c.bf16 %v508_v18, %v505_v17 }
 0x16a   : > { %1130 = vst [vmem:[#allocation2] sm:$0xff] %v1129_v20  }
 0x16b PF: > { %v1308_v21 = vld [vmem:[%s385_s7] sm:$0xff]   ;;  %v1439_v23 = vmov 0.0   ;;  %v1310_v24 = vld [vmem:[%s1780_s4] sm:$0xff]   ;;  %vm1440_vm2 = vmmov 0   ;;  %vm557_vm3 = vcmask 130048   ;;  %v1441_v26 = vmov 0  }
 0x16c   : > { %535 = vxpose.xlu0.c.b16.start.end [1/1] (short) %v1308_v21, 128  ;;  %1181 = vmatprep.subr.bf16.mxu1 %v1439_v23  ;;  %v762_v25 = vld [vmem:[%s1781_s5 + $0x8] sm:$0xff]  ;;  %v761_v27 = vld [vmem:[%s1781_s5] sm:$0xff]  ;;  %v706_v14 = vlaneseq  ;;  %p1118_p3 = scmp.ne.s32.totalorder %s1409_s30, 1 }
 0x16d   : > { %1182 = vmatpush3.bf16.msra.mxu1 %v1308_v21  ;;  %1183 = vmatprep.mubr.msk.bf16.mxu1 %vm1440_vm2, %v1439_v23  ;;  %v679_v19 = vld [vmem:[#allocation3] sm:$0x1]  ;;  %s928_s25 = sld [smem:[#allocation6]] (!%p1118_p3) }
 0x16e   : > { %1307 = vset.pattern.permute.xlu1 %v1441_v26  ;;  %v707_v17 = vshrl.u32 %v706_v14, 7 }
 0x16f   : > { %770 = vperm.xlu1 %1307, %v762_v25  }
 0x170   : > { %1184 = vmatmul.mubr.msk.bf16.vlgmr.msra.gmra.mxu1 %vm557_vm3, %v1310_v24  ;;  %v1689_v21 = vsub.s32 0, %v707_v17 }
 0x171   : > { %v1309_v22 = vld [vmem:[#allocation2] sm:$0xff]  }
 0x172   : > { %1163 = vmatprep.subr.bf16.mxu0 %v1309_v22 }
 0x173   : > { %1164 = vmatpush3.bf16.msra.mxu0 %v1309_v22 }
 0x174   : > { %1187 = vmatprep.subr.bf16.mxu0 %v1439_v23 }
 0x175   : > { %1306 = vset.pattern.permute.xlu0 %v1441_v26 }
 0x191   : > { %765 = vperm.xlu0 %1306, %v761_v27  }
 0x1ce   : > { %v543_v28 = vpop.trf.xlu0 }
 0x1cf   : > { %1165 = vmatprep.mubr.msk.bf16.mxu0 %vm557_vm3, %v543_v28 }
 0x1d2   : > { %v544_v29 = vpop.trf.xlu0 }
 0x1d3   : > { %1166 = vmatmul.mubr.msk.bf16.vlgmr.msra.gmra.mxu0 %vm557_vm3, %v544_v29 }
 0x1d6   : > { %v545_v30 = vpop.trf.xlu0 }
 0x1d7   : > { %1169 = vmatprep.mubr.msk.bf16.mxu0 %vm557_vm3, %v545_v30 }
 0x1da   : > { %v546_v31 = vpop.trf.xlu0 }
 0x1db   : > { %1170 = vmatmul.mubr.msk.bf16.gmra.mxu0 %vm557_vm3, %v546_v31 }
 0x1de   : > { %v547_v32 = vpop.trf.xlu0 }
 0x1df   : > { %1173 = vmatprep.mubr.msk.bf16.mxu0 %vm557_vm3, %v547_v32 }
 0x1e2   : > { %v548_v33 = vpop.trf.xlu0 }
 0x1e3   : > { %1174 = vmatmul.mubr.msk.bf16.gmra.mxu0 %vm557_vm3, %v548_v33 }
 0x1e6   : > { %v549_v34 = vpop.trf.xlu0 }
 0x1e7   : > { %1177 = vmatprep.mubr.msk.bf16.mxu0 %vm557_vm3, %v549_v34 }
 0x1ea   : > { %v550_v35 = vpop.trf.xlu0  ;;  %v771_v39 = vpop.permute.xlu1 %770 }
 0x1eb   : > { %1178 = vmatmul.mubr.msk.bf16.gmra.mxu0 %vm557_vm3, %v550_v35 }
 0x1ec   : > { %1203 = vmatprep.mubr.msk.bf16.mxu0 %vm1440_vm2, %v1439_v23 }
 0x20c   : > { %v766_v40 = vpop.permute.xlu0 %765 }
 0x230   : > { %v815_v36 = vpop.f32.mrf.mxu1 }
 0x231   : > { %v1658_v42 = vadd.f32 %v815_v36, %v766_v40 }
 0x232   : > { %v1185_v37 = vpop.f32.mrf.mxu1 }
 0x234   : > { %v818_v38 = vpop.f32.mrf.mxu1 }
 0x235   : > { %v1656_v41 = vadd.f32 %v818_v38, %v771_v39 }
 0x236   : > { %v1186_v43 = vpop.f32.mrf.mxu1 }
 0x237   : > { %v857_v44 = vpack.c.bf16 %v1656_v41, %v1658_v42 }
 0x293   : > { %v1167_v45 = vpop.f32.mrf.mxu0 }
 0x295   : > { %v616_v46 = vpop.f32.mrf.mxu0 }
 0x297   : > { %v1168_v47 = vpop.f32.mrf.mxu0 }
 0x299   : > { %v619_v48 = vpop.f32.mrf.mxu0 }
 0x29b   : > { %v1662_v49 = vpop.f32.mrf.mxu0 }
 0x29c   : > { %v682_v60 = vmax.f32 %v1167_v45, %v1662_v49 }
 0x29d   : > { %v632_v50 = vpop.f32.mrf.mxu0 }
 0x29e   : > { %v680_v61 = vmax.f32 %v616_v46, %v632_v50 }
 0x29f   : > { %v1664_v51 = vpop.f32.mrf.mxu0 }
 0x2a0   : > { %v683_v58 = vmax.f32 %v1168_v47, %v1664_v51 }
 0x2a1   : > { %v635_v52 = vpop.f32.mrf.mxu0 }
 0x2a2   : > { %v681_v62 = vmax.f32 %v619_v48, %v635_v52 }
 0x2a3   : > { %v1666_v53 = vpop.f32.mrf.mxu0 }
 0x2a4   : > { %v686_v1 = vmax.f32 %v682_v60, %v1666_v53 }
 0x2a5   : > { %v1668_v54 = vpop.f32.mrf.mxu0 }
 0x2a6   : > { %v684_v2 = vmax.f32 %v680_v61, %v1668_v54 }
 0x2a7   : > { %v1670_v55 = vpop.f32.mrf.mxu0 }
 0x2a8   : > { %v687_v63 = vmax.f32 %v683_v58, %v1670_v55 }
 0x2a9   : > { %v1672_v56 = vpop.f32.mrf.mxu0 }
 0x2aa   : > { %v685_v3 = vmax.f32 %v681_v62, %v1672_v56 }
 0x2ab   : > { %v1674_v57 = vpop.f32.mrf.mxu0 }
 0x2ac   : > { %v690_v6 = vmax.f32 %v686_v1, %v1674_v57 }
 0x2ad   : > { %v1677_v59 = vpop.f32.mrf.mxu0 }
 0x2ae   : > { %v688_v7 = vmax.f32 %v684_v2, %v1677_v59 }
 0x2af   : > { %v1180_v0 = vpop.f32.mrf.mxu0 }
 0x2b0   : > { %v691_v4 = vmax.f32 %v687_v63, %v1180_v0 }
 0x2b1   : > { %v1684_v5 = vpop.f32.mrf.mxu0 }
 0x2b2   : > { %v689_v8 = vmax.f32 %v685_v3, %v1684_v5  ;;  %v693_v9 = vmax.f32 %v690_v6, %v691_v4 }
 0x2b4   : > { %v692_v10 = vmax.f32 %v688_v7, %v689_v8 }
 0x2b6   : > { %v694_v11 = vmax.f32 %v692_v10, %v693_v9 }
 0x2b8   : > { %v695_v12 = vrot.slane %v694_v11, 4 }
 0x2ba   : > { %v696_v13 = vmax.f32 %v694_v11, %v695_v12 }
 0x2bc   : > { %v697_v15 = vrot.slane %v696_v13, 2 }
 0x2be   : > { %v698_v16 = vmax.f32 %v696_v13, %v697_v15 }
 0x2c0   : > { %v699_v18 = vrot.slane %v698_v16, 1 }
 0x2c2   : > { %v700_v20 = vmax.f32 %v698_v16, %v699_v18 }
 0x2c4   : > { %v701_v22 = vmax.f32 %v679_v19, %v700_v20 }
 0x2c6   : > { %v702_v24 = vsub.f32 %v679_v19, %v701_v22  ;;  %v709_v25 = vrot.slane %v701_v22, %v1689_v21  ;;  %911 = vst [vmem:[#allocation3] sm:$0x1] %v701_v22 }
 0x2c8   : > { %v711_v26 = vsub.f32 %v616_v46, %v709_v25  ;;  %v712_v27 = vsub.f32 %v619_v48, %v709_v25  ;;  %v703_v28 = vmul.f32 1.442695, %v702_v24  ;;  %v713_v29 = vsub.f32 %v1167_v45, %v709_v25 }
 0x2c9   : > { %v714_v30 = vsub.f32 %v1168_v47, %v709_v25  ;;  %v715_v33 = vsub.f32 %v632_v50, %v709_v25  ;;  %v716_v35 = vsub.f32 %v635_v52, %v709_v25  ;;  %v717_v37 = vsub.f32 %v1662_v49, %v709_v25 }
 0x2ca   : > { %v727_v31 = vmul.f32 1.442695, %v711_v26  ;;  %v729_v32 = vmul.f32 1.442695, %v712_v27  ;;  %v731_v34 = vmul.f32 1.442695, %v713_v29  ;;  %1311 = vpow2.f32 %v703_v28 }
 0x2cb   : > { %v733_v36 = vmul.f32 1.442695, %v714_v30  ;;  %v718_v38 = vsub.f32 %v1664_v51, %v709_v25  ;;  %v735_v39 = vmul.f32 1.442695, %v715_v33  ;;  %v719_v40 = vsub.f32 %v1668_v54, %v709_v25 }
 0x2cc   : > { %1313 = vpow2.f32 %v727_v31  ;;  %v720_v43 = vsub.f32 %v1672_v56, %v709_v25  ;;  %v737_v45 = vmul.f32 1.442695, %v716_v35  ;;  %v725_v46 = vsub.f32 %v1674_v57, %v709_v25 }
 0x2cd   : > { %1315 = vpow2.f32 %v729_v32  ;;  %v739_v47 = vmul.f32 1.442695, %v717_v37  ;;  %v726_v48 = vsub.f32 %v1180_v0, %v709_v25  ;;  %v741_v50 = vmul.f32 1.442695, %v718_v38 }
 0x2ce   : > { %1317 = vpow2.f32 %v731_v34  ;;  %v723_v52 = vsub.f32 %v1677_v59, %v709_v25  ;;  %v743_v58 = vmul.f32 1.442695, %v719_v40  ;;  %v724_v49 = vsub.f32 %v1684_v5, %v709_v25 }
 0x2cf   : > { %1319 = vpow2.f32 %v733_v36  ;;  %v745_v51 = vmul.f32 1.442695, %v720_v43  ;;  %v755_v60 = vmul.f32 1.442695, %v725_v46  ;;  %v721_v54 = vsub.f32 %v1666_v53, %v709_v25  ;;  %v822_v46 = vld [vmem:[#allocation4] sm:$0x1] }
 0x2d0   : > { %1321 = vpow2.f32 %v735_v39  ;;  %v757_v56 = vmul.f32 1.442695, %v726_v48  ;;  %v751_v57 = vmul.f32 1.442695, %v723_v52  ;;  %v722_v63 = vsub.f32 %v1670_v55, %v709_v25 }
 0x2d1   : > { %1323 = vpow2.f32 %v737_v45  ;;  %v753_v59 = vmul.f32 1.442695, %v724_v49  ;;  %v747_v53 = vmul.f32 1.442695, %v721_v54 }
 0x2d2   : > { %1325 = vpow2.f32 %v739_v47  ;;  %v749_v4 = vmul.f32 1.442695, %v722_v63 }
 0x2d3   : > { %1327 = vpow2.f32 %v741_v50 }
 0x2d4   : > { %1329 = vpow2.f32 %v743_v58 }
 0x2d5   : > { %1331 = vpow2.f32 %v745_v51  ;;  %v847_v51 = vld [vmem:[#allocation5] sm:$0xff] }
 0x2d6   : > { %1333 = vpow2.f32 %v755_v60 }
 0x2d7   : > { %v1700_v61 = vpop.eup %1311  ;;  %1335 = vpow2.f32 %v757_v56  ;;  %v848_v56 = vld [vmem:[#allocation5 + $0x8] sm:$0xff] }
 0x2d8   : > { %v1707_v0 = vrot.slane %v1700_v61, %v1689_v21  ;;  %1337 = vpow2.f32 %v751_v57  ;;  %v823_v52 = vmul.f32 %v1700_v61, %v822_v46 }
 0x2d9   : > { %v1702_v62 = vpop.eup %1313  ;;  %1339 = vpow2.f32 %v753_v59 }
 0x2da   : > { %v1709_v1 = vpop.eup %1315  ;;  %1341 = vpow2.f32 %v747_v53  ;;  %v855_v60 = vmul.f32 %v1707_v0, %v847_v51 }
 0x2db   : > { %v824_v2 = vadd.f32 %v1709_v1, %v1702_v62  ;;  %v1318_v3 = vpop.eup %1317  ;;  %1343 = vpow2.f32 %v749_v4  ;;  %v858_v58 = vpack.c.bf16 %v1709_v1, %v1702_v62 }
 0x2dc   : > { %v1320_v55 = vpop.eup %1319 }
 0x2dd   : > { %v825_v5 = vadd.f32 %v1318_v3, %v824_v2  ;;  %v1322_v7 = vpop.eup %1321  ;;  %v859_v48 = vpack.c.bf16 %v1320_v55, %v1318_v3 }
 0x2de   : > { %v1324_v9 = vpop.eup %1323 }
 0x2df   : > { %v826_v6 = vadd.f32 %v1320_v55, %v825_v5  ;;  %v1326_v10 = vpop.eup %1325  ;;  %v860_v43 = vpack.c.bf16 %v1324_v9, %v1322_v7 }
 0x2e0   : > { %v1328_v12 = vpop.eup %1327 }
 0x2e1   : > { %v827_v8 = vadd.f32 %v1322_v7, %v826_v6  ;;  %v1330_v13 = vpop.eup %1329  ;;  %v861_v38 = vpack.c.bf16 %v1328_v12, %v1326_v10 }
 0x2e2   : > { %v1332_v15 = vpop.eup %1331 }
 0x2e3   : > { %v828_v11 = vadd.f32 %v1324_v9, %v827_v8  ;;  %v1334_v16 = vpop.eup %1333  ;;  %v862_v35 = vpack.c.bf16 %v1332_v15, %v1330_v13 }
 0x2e4   : > { %v1336_v18 = vpop.eup %1335 }
 0x2e5   : > { %v829_v14 = vadd.f32 %v1326_v10, %v828_v11  ;;  %v1338_v19 = vpop.eup %1337  ;;  %v865_v22 = vpack.c.bf16 %v1336_v18, %v1334_v16 }
 0x2e6   : > { %v1340_v24 = vpop.eup %1339 }
 0x2e7   : > { %v830_v17 = vadd.f32 %v1328_v12, %v829_v14  ;;  %1188 = vmatpush3.bf16.msra.mxu0 %v865_v22  ;;  %v1342_v26 = vpop.eup %1341  ;;  %v864_v28 = vpack.c.bf16 %v1340_v24, %v1338_v19 }
 0x2e8   : > { %1189 = vmatprep.subr.bf16.mxu0 %v1439_v23  ;;  %v1344_v29 = vpop.eup %1343 }
 0x2e9   : > { %v831_v20 = vadd.f32 %v1330_v13, %v830_v17  ;;  %v863_v32 = vpack.c.bf16 %v1344_v29, %v1342_v26 }
 0x2eb   : > { %v832_v25 = vadd.f32 %v1332_v15, %v831_v20  ;;  %1190 = vmatpush3.bf16.msra.mxu0 %v864_v28 }
 0x2ec   : > { %1191 = vmatprep.subr.bf16.mxu0 %v1439_v23 }
 0x2ed   : > { %v833_v27 = vadd.f32 %v1342_v26, %v832_v25 }
 0x2ef   : > { %v834_v30 = vadd.f32 %v1344_v29, %v833_v27  ;;  %1192 = vmatpush3.bf16.msra.mxu0 %v863_v32 }
 0x2f0   : > { %1193 = vmatprep.subr.bf16.mxu0 %v1439_v23 }
 0x2f1   : > { %v835_v31 = vadd.f32 %v1338_v19, %v834_v30 }
 0x2f3   : > { %v836_v33 = vadd.f32 %v1340_v24, %v835_v31  ;;  %1194 = vmatpush3.bf16.msra.mxu0 %v862_v35 }
 0x2f4   : > { %1195 = vmatprep.subr.bf16.mxu0 %v1439_v23 }
 0x2f5   : > { %v837_v34 = vadd.f32 %v1334_v16, %v836_v33 }
 0x2f7   : > { %v838_v36 = vadd.f32 %v1336_v18, %v837_v34  ;;  %1196 = vmatpush3.bf16.msra.mxu0 %v861_v38 }
 0x2f8   : > { %1197 = vmatprep.subr.bf16.mxu0 %v1439_v23 }
 0x2f9   : > { %v839_v37 = vrot.slane %v838_v36, 4 }
 0x2fb   : > { %v840_v39 = vadd.f32 %v839_v37, %v838_v36  ;;  %1198 = vmatpush3.bf16.msra.mxu0 %v860_v43 }
 0x2fc   : > { %1199 = vmatprep.subr.bf16.mxu0 %v1439_v23 }
 0x2fd   : > { %v841_v40 = vrot.slane %v840_v39, 2 }
 0x2ff   : > { %v842_v45 = vadd.f32 %v841_v40, %v840_v39  ;;  %1200 = vmatpush3.bf16.msra.mxu0 %v859_v48 }
 0x300   : > { %1201 = vmatprep.subr.bf16.mxu0 %v1439_v23  ;;  %v856_v23 = vmul.f32 %v1707_v0, %v848_v56 }
 0x301   : > { %v843_v47 = vrot.slane %v842_v45, 1 }
 0x303   : > { %v844_v50 = vadd.f32 %v843_v47, %v842_v45  ;;  %1202 = vmatpush3.bf16.msra.mxu0 %v858_v58 }
 0x305   : > { %v845_v49 = vadd.f32 %v844_v50, %v823_v52 }
 0x306   : > { %1204 = vmatmul.mubr.bf16.vlgmr.msra.gmra.mxu0 %v857_v44 }
 0x307   : > { %846 = vst [vmem:[#allocation4] sm:$0x1] %v845_v49 }
 0x3c6   : > { %v900_v54 = vpop.f32.mrf.mxu0 }
 0x3c7   : > { %v907_v57 = vadd.f32 %v900_v54, %v855_v60 }
 0x3c8   : > { %v1205_v63 = vpop.f32.mrf.mxu0 }
 0x3c9   : > { %909 = vst [vmem:[#allocation5] sm:$0xff] %v907_v57  ;;  %915 = sbr.rel (%p1118_p3) target bundleno = 998 (0x3e6), region = 138 }
 0x3ca   : > { %v903_v61 = vpop.f32.mrf.mxu0 }
 0x3cb   : > { %v908_v59 = vadd.f32 %v903_v61, %v856_v23 }
 0x3cc   : > { %v1206_v62 = vpop.f32.mrf.mxu0 }
 0x3cd   : > { %910 = vst [vmem:[#allocation5 + $0x8] sm:$0xff] %v908_v59 }
 0x3ce   : > { %v916_v1 = vld [vmem:[#allocation4] sm:$0x1]  ;;  %v929_v2 = vstv %s928_s25 }
 0x3cf   : > { %1345 = vrcp.f32 %v916_v1  ;;  %v1132_v44 = vld [vmem:[%s378_s17] sm:$0xff]  }
 0x3d0   : > { %v918_v42 = vld [vmem:[#allocation5] sm:$0xff]  ;;  %v1133_v4 = vunpack.c.l.bf16 %v1132_v44  ;;  %v1134_v55 = vunpack.c.h.bf16 %v1132_v44 }
 0x3d4   : > { %v919_v53 = vld [vmem:[#allocation5 + $0x8] sm:$0xff] }
 0x3dc   : > { %v1346_v41 = vpop.eup %1345 }
 0x3dd   : > { %v924_v0 = vrot.slane %v1346_v41, %v1689_v21 }
 0x3df   : > { %v926_v3 = vmul.f32 %v924_v0, %v918_v42  ;;  %v927_v5 = vmul.f32 %v924_v0, %v919_v53 }
 0x3e1   : > { %v930_v6 = vmul.f32 %v929_v2, %v926_v3  ;;  %v931_v7 = vmul.f32 %v929_v2, %v927_v5 }
 0x3e3   : > { %v936_v8 = vadd.f32 %v1133_v4, %v930_v6  ;;  %v937_v9 = vadd.f32 %v1134_v55, %v931_v7 }
 0x3e5   : > { %938 = vst [vmem:[%s1616_s15] sm:$0xff] %v936_v8  ;;  %939 = vst [vmem:[%s1616_s15 + $0x8] sm:$0xff] %v937_v9 }
 0x3e6 PF: > { %946 = sbr.rel (!%p1576_p9) target bundleno = 1008 (0x3f0), region = 142  ;;  %s1797_s30 = sld [smem:[#allocation10_spill]] (%p1576_p9) }
 0x3e7   : > { %s1120_s21 = sshll.u32 (%p1576_p9), %s1417_s9, 2  ;;  %s1798_s23 = sld [smem:[#allocation15_spill]] (%p1576_p9) }
 0x3ec   : > { %s948_s17 = sadd.s32 %s1797_s30, %s1120_s21  ;;  %v981_v21 = vld [vmem:[%s1616_s15] sm:$0xff]  ;;  %v983_v10 = vld [vmem:[%s1616_s15 + $0x8] sm:$0xff] }
 0x3ed   : > { %s1121_s19 = sshll.u32 %s948_s17, 3 }
 0x3ee   : > { %s950_s18 = scalar_lea.vmem %s1798_s23, %s1121_s19 }
 0x3ef   : > { %982 = vst [vmem:[%s950_s18] sm:$0xff] %v981_v21  ;;  %984 = vst [vmem:[%s950_s18 + $0x10] sm:$0xff] %v983_v10 }
 0x3f0 PF: > { %s18_s6 = sadd.s32 1, %s1433_s6   ;;  %s1799_s8 = sld [smem:[#allocation11_spill]] }
 0x3f1   : > { %p15_p4 = scmp.ge.s32.totalorder %s18_s6, 10   ;;  %s1800_s22 = sld [smem:[#allocation12_spill]] }
 0x3f2   : > { %s1801_s11 = sld [smem:[#allocation13_spill]]  ;;  %s1803_s26 = smov %s1397_s27 }
 0x3f3   : > { %s1802_s15 = sld [smem:[#allocation14_spill]]  ;;  %s1804_s27 = smov %s1587_s14 }
 0x3f4   : > { %s1805_s28 = smov %s1405_s29  ;;  %s1806_s29 = smov %s1584_s16 }
 0x3f5   : > { %s1807_s30 = smov %s1421_s10  ;;  %s1808_s9 = smov %s1429_s12 }
 0x3f6   :  { %17 = sbr.rel (!%p15_p4) target bundleno = 9 (0x9), region = 219 }
 0x3f7   : > { %s1809_s10 = smov %s1800_s22 }
 0x3f9   : > { %s1810_s12 = smov %s1802_s15 }

</bundles_post_ra>
